<compile_context>
chip_gen: v7x
topology: tpu7x:2x2x1
jax: 0.10.0
libtpu: 0.0.40
codegen_flags: <defaults>
</compile_context>

<pallas_src>
import functools

import jax
import jax.numpy as jnp
from jax import lax
from jax.experimental import pallas as pl
from jax.experimental.pallas import tpu as pltpu

LANES = 128                       # lane tile (last dim)
SUBLANES = 8                      # f32 sublane tile
STRIP_ROWS = 256                  # per-strip compute tile: (256, 128)
TARGET_STEP_BYTES = 4 * 1024 * 1024   # ~HBM bytes (both streams) per grid step
MAX_BLOCK_ROWS = 8192             # absolute cap on rows per grid step


def _num_slices():
    """2 for chips with two TensorCores sharing HBM (v4/v5p megacore, v7x)."""
    try:
        dev = jax.devices()[0]
        if dev.platform != "tpu":
            return 1
        kind = dev.device_kind.lower()
        if "lite" in kind or "v5e" in kind or "v6e" in kind:
            return 1              # v5e / v6e: single TensorCore per chip
        if "v4" in kind or "v5p" in kind or "v7" in kind or "7x" in kind:
            return 2              # megacore / dual-TC chips
        return 1
    except Exception:             # pragma: no cover - defensive default
        return 1


def _dice_sums_kernel(p_ref, t_ref, inter_ref, den_ref, inter_acc, den_acc,
                      *, n_valid, strip_rows):
    """Accumulate sum(sigmoid(p)*t) and sum(sigmoid(p)+t) per grid slice.

    p_ref, t_ref : (block_rows, LANES) VMEM tiles (native dtypes)
    inter_ref, den_ref : (1, 1) SMEM per-slice partial sums (outputs)
    inter_acc, den_acc : (8, LANES) f32 VMEM vector accumulators (scratch)
    n_valid, strip_rows : static Python ints (true element count, strip size)
    """
    c = pl.program_id(0)
    i = pl.program_id(1)
    chunks = pl.num_programs(1)

    block_rows = p_ref.shape[0]
    tile_elems = block_rows * LANES
    blk = c * chunks + i                    # logical (unclamped) block index
    n_full_blocks = n_valid // tile_elems   # static: blocks that are 100% valid

    @pl.when(i == 0)
    def _():
        inter_acc[...] = jnp.zeros_like(inter_acc)
        den_acc[...] = jnp.zeros_like(den_acc)

    def accumulate(masked):
        if masked:
            # Valid elements remaining in this block (<= 0 for phantom blocks
            # that were index-clamped onto the last real block).
            rem = n_valid - blk * tile_elems
            row_l = lax.broadcasted_iota(jnp.int32, (strip_rows, LANES), 0)
            lane_l = lax.broadcasted_iota(jnp.int32, (strip_rows, LANES), 1)
            local = row_l * LANES + lane_l   # hoisted out of the strip loop

        def strip(j, carry):
            r0 = pl.multiple_of(j * strip_rows, strip_rows)
            p = jax.nn.sigmoid(
                p_ref[pl.ds(r0, strip_rows), :].astype(jnp.float32))
            t = t_ref[pl.ds(r0, strip_rows), :].astype(jnp.float32)
            prod = p * t
            s = p + t
            if masked:
                # jnp.where (not multiply) so garbage/NaN rows from a partial
                # DMA or pad elements contribute exactly zero.
                valid = (local + r0 * LANES) < rem
                prod = jnp.where(valid, prod, 0.0)
                s = jnp.where(valid, s, 0.0)
            # (strip_rows, 128) -> (8, 128) leading-dim sum: pure VPU adds.
            inter_acc[...] += prod.reshape(-1, SUBLANES, LANES).sum(axis=0)
            den_acc[...] += s.reshape(-1, SUBLANES, LANES).sum(axis=0)
            return carry

        lax.fori_loop(0, block_rows // strip_rows, strip, 0)

    # Fast path for fully-valid interior blocks; masked path only for the
    # final block(s) containing the tail / partial DMA / phantom duplicates.
    @pl.when(blk < n_full_blocks)
    def _():
        accumulate(False)

    @pl.when(blk >= n_full_blocks)
    def _():
        accumulate(True)

    # Single cross-lane reduce + SMEM write only on the last chunk per slice.
    @pl.when(i == chunks - 1)
    def _():
        inter_ref[0, 0] = jnp.sum(inter_acc[...])
        den_ref[0, 0] = jnp.sum(den_acc[...])


def _dice_sums(y_pred, y_true):
    assert y_pred.shape == y_true.shape
    n = int(y_pred.size)

    p = jnp.reshape(y_pred, (-1,))
    t = jnp.reshape(y_true, (-1,))

    # Predictions must be floating (sigmoid); stream native bf16/f16/f32.
    if not jnp.issubdtype(p.dtype, jnp.floating) or p.dtype.itemsize > 4:
        p = p.astype(jnp.float32)
    # Targets stream in their native (narrow) dtype; cast to f32 in-register.
    if t.dtype == jnp.bool_:
        t = t.astype(jnp.int8)
    elif jnp.issubdtype(t.dtype, jnp.floating) and t.dtype.itemsize > 4:
        t = t.astype(jnp.float32)
    elif jnp.issubdtype(t.dtype, jnp.integer) and t.dtype.itemsize > 4:
        t = t.astype(jnp.int32)

    # Pad only up to a whole number of (8, 128) rows.  The in-kernel mask on
    # the true element count makes pad values irrelevant (no -inf trick).
    row_elems = SUBLANES * LANES
    padded = pl.cdiv(n, row_elems) * row_elems
    if padded != n:
        # TODO(synk): this pad is a full HBM copy; it only fires when numel is
        # not a multiple of 1024, which is rare for real 3D volumes.
        p = jnp.pad(p, (0, padded - n))
        t = jnp.pad(t, (0, padded - n))

    rows = padded // LANES
    p2 = p.reshape(rows, LANES)
    t2 = t.reshape(rows, LANES)

    # Block geometry: big DMA blocks, strip-sized compute.
    step_bytes = LANES * (p2.dtype.itemsize + t2.dtype.itemsize)
    cap = min(MAX_BLOCK_ROWS, TARGET_STEP_BYTES // step_bytes)
    cap = max(STRIP_ROWS, (cap // STRIP_ROWS) * STRIP_ROWS)
    if rows <= 2 * STRIP_ROWS:
        block_rows, strip_rows = rows, rows          # rows is a multiple of 8
    else:
        block_rows = min(cap, (rows // STRIP_ROWS) * STRIP_ROWS)
        strip_rows = STRIP_ROWS

    total_blocks = pl.cdiv(rows, block_rows)
    num_slices = _num_slices()
    if total_blocks < 2 * num_slices:
        num_slices = 1
    chunks = pl.cdiv(total_blocks, num_slices)
    last_block = total_blocks - 1

    # Clamp phantom blocks (only exist when total_blocks % num_slices != 0)
    # onto the last real block; the in-kernel mask zeroes their contribution.
    def in_map(c, i):
        return (jnp.minimum(c * chunks + i, last_block), 0)

    in_spec = pl.BlockSpec((block_rows, LANES), in_map)
    out_spec = pl.BlockSpec((1, 1), lambda c, i: (c, 0),
                            memory_space=pltpu.SMEM)

    kernel = functools.partial(_dice_sums_kernel,
                               n_valid=n, strip_rows=strip_rows)

    inter, den = pl.pallas_call(
        kernel,
        out_shape=(
            jax.ShapeDtypeStruct((num_slices, 1), jnp.float32),
            jax.ShapeDtypeStruct((num_slices, 1), jnp.float32),
        ),
        grid_spec=pltpu.PrefetchScalarGridSpec(
            num_scalar_prefetch=0,
            grid=(num_slices, chunks),
            in_specs=[in_spec, in_spec],
            out_specs=[out_spec, out_spec],
            scratch_shapes=[pltpu.VMEM((SUBLANES, LANES), jnp.float32)] * 2,
        ),
        compiler_params=pltpu.CompilerParams(
            dimension_semantics=("parallel", "arbitrary")),
    )(p2, t2)

    # Combine the tiny per-slice partial sums in plain JAX.
    return jnp.sum(inter), jnp.sum(den)


def dice_loss(y_pred, y_true, log_cosh=False, smooth=1.0):
    """Matches DiceLoss.forward: sigmoid(pred), flatten, soft dice, 1 - dsc."""
    inter, den = _dice_sums(y_pred, y_true)
    dsc = (2.0 * inter + smooth) / (den + smooth)
    dsc_loss = 1.0 - dsc
    if log_cosh:
        return jnp.log((jnp.exp(dsc_loss) + jnp.exp(-dsc_loss)) / 2.0)
    return dsc_loss


def _dice_loss_ref(y_pred, y_true, log_cosh=False, smooth=1.0):
    """Pure-JAX reference for correctness checking."""
    p = jax.nn.sigmoid(y_pred.astype(jnp.float32)).reshape(-1)
    t = y_true.astype(jnp.float32).reshape(-1)
    inter = jnp.sum(p * t)
    dsc = (2.0 * inter + smooth) / (jnp.sum(p) + jnp.sum(t) + smooth)
    loss = 1.0 - dsc
    if log_cosh:
        return jnp.log((jnp.exp(loss) + jnp.exp(-loss)) / 2.0)
    return loss


if __name__ == "__main__":
    key = jax.random.PRNGKey(0)
    k = jax.random.split(key, 8)

    # 1) Small NCHW f32 case, plus the log-cosh variant.
    y_pred = jax.random.normal(k[0], (2, 4, 16, 16), dtype=jnp.float32)
    y_true = (jax.random.uniform(k[1], (2, 4, 16, 16)) > 0.5).astype(jnp.float32)
    out = jax.block_until_ready(dice_loss(y_pred, y_true))
    out_lc = jax.block_until_ready(dice_loss(y_pred, y_true, log_cosh=True))
    ref = _dice_loss_ref(y_pred, y_true)
    ref_lc = _dice_loss_ref(y_pred, y_true, log_cosh=True)
    assert jnp.allclose(out, ref, atol=1e-5, rtol=1e-5), (out, ref)
    assert jnp.allclose(out_lc, ref_lc, atol=1e-5, rtol=1e-5), (out_lc, ref_lc)

    # 2) Ragged bf16 case (462 elements): exercises pad-to-(8,128) + mask.
    y_pred_b = jax.random.normal(k[2], (2, 3, 7, 11), dtype=jnp.bfloat16)
    y_true_b = (jax.random.uniform(k[3], (2, 3, 7, 11)) > 0.5).astype(jnp.bfloat16)
    out_b = jax.block_until_ready(dice_loss(y_pred_b, y_true_b))
    ref_b = _dice_loss_ref(y_pred_b, y_true_b)
    assert jnp.allclose(out_b, ref_b, atol=1e-5, rtol=1e-4), (out_b, ref_b)

    # 3) bf16 predictions + int8 targets: native narrow target stream.
    y_pred_i = jax.random.normal(k[4], (2, 4, 64, 64), dtype=jnp.bfloat16)
    y_true_i = (jax.random.uniform(k[5], (2, 4, 64, 64)) > 0.5).astype(jnp.int8)
    out_i = jax.block_until_ready(dice_loss(y_pred_i, y_true_i))
    ref_i = _dice_loss_ref(y_pred_i, y_true_i)
    assert jnp.allclose(out_i, ref_i, atol=1e-5, rtol=1e-4), (out_i, ref_i)

    # 4) Multi-block f32 case with a partial (masked) last block.
    y_pred_l = jax.random.normal(k[6], (4, 4, 96, 96), dtype=jnp.float32)
    y_true_l = (jax.random.uniform(k[7], (4, 4, 96, 96)) > 0.5).astype(jnp.float32)
    out_l = jax.block_until_ready(dice_loss(y_pred_l, y_true_l))
    ref_l = _dice_loss_ref(y_pred_l, y_true_l)
    assert jnp.allclose(out_l, ref_l, atol=1e-5, rtol=1e-4), (out_l, ref_l)

    print("KERNEL_OK")
</pallas_src>

<mosaic_0001>
module attributes {stable_mosaic.version = 11 : i64} {
  func.func @_dice_sums_kernel(%arg0: i32, %arg1: i32, %arg2: memref<16x128xf32, #tpu.memory_space<vmem>>, %arg3: memref<16x128xf32, #tpu.memory_space<vmem>>, %arg4: memref<1x1xf32, #tpu.memory_space<smem>>, %arg5: memref<1x1xf32, #tpu.memory_space<smem>>, %arg6: memref<8x128xf32, #tpu.memory_space<vmem>>, %arg7: memref<8x128xf32, #tpu.memory_space<vmem>>) attributes {dimension_semantics = [#tpu.dimension_semantics<parallel>, #tpu.dimension_semantics<arbitrary>], iteration_bounds = array<i64: 1, 1>, scalar_prefetch = 0 : i64, scratch_operands = 2 : i64, tpu.core_type = #tpu.core_type<tc>, window_params = [{transform_indices = @transform_0, window_bounds = array<i64: 16, 128>}, {transform_indices = @transform_1, window_bounds = array<i64: 16, 128>}, {transform_indices = @transform_2, window_bounds = array<i64: 1, 1>}, {transform_indices = @transform_3, window_bounds = array<i64: 1, 1>}]} {
    %c1_i32 = arith.constant 1 : i32
    %0 = arith.muli %arg0, %c1_i32 : i32
    %1 = arith.addi %0, %arg1 : i32
    %c0_i32 = arith.constant 0 : i32
    %2 = arith.cmpi eq, %arg1, %c0_i32 : i32
    %3 = arith.extui %2 : i1 to i32
    %c0_i32_0 = arith.constant 0 : i32
    %4 = arith.cmpi ne, %3, %c0_i32_0 : i32
    scf.if %4 {
      %cst = arith.constant 0.000000e+00 : f32
      %14 = vector.broadcast %cst : f32 to vector<8x128xf32>
      %c0 = arith.constant 0 : index
      %c0_7 = arith.constant 0 : index
      %15 = vector.load %arg6[%c0, %c0_7] : memref<8x128xf32, #tpu.memory_space<vmem>>, vector<8x128xf32>
      tpu.vector_store %arg6[%c0, %c0_7], %14 {strides = array<i32>} : memref<8x128xf32, #tpu.memory_space<vmem>>, vector<8x128xf32>,
      %cst_8 = arith.constant 0.000000e+00 : f32
      %16 = vector.broadcast %cst_8 : f32 to vector<8x128xf32>
      %c0_9 = arith.constant 0 : index
      %c0_10 = arith.constant 0 : index
      %17 = vector.load %arg7[%c0_9, %c0_10] : memref<8x128xf32, #tpu.memory_space<vmem>>, vector<8x128xf32>
      tpu.vector_store %arg7[%c0_9, %c0_10], %16 {strides = array<i32>} : memref<8x128xf32, #tpu.memory_space<vmem>>, vector<8x128xf32>,
    } else {
    }
    %c1_i32_1 = arith.constant 1 : i32
    %5 = arith.cmpi slt, %1, %c1_i32_1 : i32
    %6 = arith.extui %5 : i1 to i32
    %c0_i32_2 = arith.constant 0 : i32
    %7 = arith.cmpi ne, %6, %c0_i32_2 : i32
    scf.if %7 {
      %c0_i32_7 = arith.constant 0 : i32
      %c16_i32 = arith.constant 16 : i32
      %14 = arith.muli %c0_i32_7, %c16_i32 : i32
      %15 = tpu.assume_multiple %14, 16 : i32
      %16 = arith.index_cast %15 : i32 to index
      %c0 = arith.constant 0 : index
      %17 = vector.load %arg2[%16, %c0] : memref<16x128xf32, #tpu.memory_space<vmem>>, vector<16x128xf32>
      %18 = arith.negf %17 : vector<16x128xf32>
      %19 = math.exp %18 : vector<16x128xf32>
      %cst = arith.constant 1.000000e+00 : f32
      %20 = vector.broadcast %cst : f32 to vector<16x128xf32>
      %21 = arith.addf %20, %19 : vector<16x128xf32>
      %22 = arith.divf %20, %21 : vector<16x128xf32>
      %23 = arith.index_cast %15 : i32 to index
      %c0_8 = arith.constant 0 : index
      %24 = vector.load %arg3[%23, %c0_8] : memref<16x128xf32, #tpu.memory_space<vmem>>, vector<16x128xf32>
      %25 = arith.mulf %22, %24 : vector<16x128xf32>
      %26 = arith.addf %22, %24 : vector<16x128xf32>
      %c0_9 = arith.constant 0 : index
      %c0_10 = arith.constant 0 : index
      %27 = vector.load %arg6[%c0_9, %c0_10] : memref<8x128xf32, #tpu.memory_space<vmem>>, vector<8x128xf32>
      %28 = vector.shape_cast %25 : vector<16x128xf32> to vector<2x8x128xf32>
      %cst_11 = arith.constant dense<0.000000e+00> : vector<8x128xf32>
      %29 = vector.multi_reduction <add>, %28, %cst_11 [0] : vector<2x8x128xf32> to vector<8x128xf32>
      %30 = arith.addf %27, %29 : vector<8x128xf32>
      %c0_12 = arith.constant 0 : index
      %c0_13 = arith.constant 0 : index
      %31 = vector.load %arg6[%c0_12, %c0_13] : memref<8x128xf32, #tpu.memory_space<vmem>>, vector<8x128xf32>
      tpu.vector_store %arg6[%c0_12, %c0_13], %30 {strides = array<i32>} : memref<8x128xf32, #tpu.memory_space<vmem>>, vector<8x128xf32>,
      %c0_14 = arith.constant 0 : index
      %c0_15 = arith.constant 0 : index
      %32 = vector.load %arg7[%c0_14, %c0_15] : memref<8x128xf32, #tpu.memory_space<vmem>>, vector<8x128xf32>
      %33 = vector.shape_cast %26 : vector<16x128xf32> to vector<2x8x128xf32>
      %cst_16 = arith.constant dense<0.000000e+00> : vector<8x128xf32>
      %34 = vector.multi_reduction <add>, %33, %cst_16 [0] : vector<2x8x128xf32> to vector<8x128xf32>
      %35 = arith.addf %32, %34 : vector<8x128xf32>
      %c0_17 = arith.constant 0 : index
      %c0_18 = arith.constant 0 : index
      %36 = vector.load %arg7[%c0_17, %c0_18] : memref<8x128xf32, #tpu.memory_space<vmem>>, vector<8x128xf32>
      tpu.vector_store %arg7[%c0_17, %c0_18], %35 {strides = array<i32>} : memref<8x128xf32, #tpu.memory_space<vmem>>, vector<8x128xf32>,
      %c1_i32_19 = arith.constant 1 : i32
    } else {
    }
    %c1_i32_3 = arith.constant 1 : i32
    %8 = arith.cmpi sge, %1, %c1_i32_3 : i32
    %9 = arith.extui %8 : i1 to i32
    %c0_i32_4 = arith.constant 0 : i32
    %10 = arith.cmpi ne, %9, %c0_i32_4 : i32
    scf.if %10 {
      %c2048_i32 = arith.constant 2048 : i32
      %14 = arith.muli %1, %c2048_i32 : i32
      %c2048_i32_7 = arith.constant 2048 : i32
      %15 = arith.subi %c2048_i32_7, %14 : i32
      %16 = tpu.iota {dimensions = array<i32: 0>} : vector<16x128xi32>
      %17 = tpu.iota {dimensions = array<i32: 1>} : vector<16x128xi32>
      %c128_i32 = arith.constant 128 : i32
      %18 = vector.broadcast %c128_i32 : i32 to vector<16x128xi32>
      %19 = arith.muli %16, %18 : vector<16x128xi32>
      %20 = arith.addi %19, %17 : vector<16x128xi32>
      %c0_i32_8 = arith.constant 0 : i32
      %c16_i32 = arith.constant 16 : i32
      %21 = arith.muli %c0_i32_8, %c16_i32 : i32
      %22 = tpu.assume_multiple %21, 16 : i32
      %23 = arith.index_cast %22 : i32 to index
      %c0 = arith.constant 0 : index
      %24 = vector.load %arg2[%23, %c0] : memref<16x128xf32, #tpu.memory_space<vmem>>, vector<16x128xf32>
      %25 = arith.negf %24 : vector<16x128xf32>
      %26 = math.exp %25 : vector<16x128xf32>
      %cst = arith.constant 1.000000e+00 : f32
      %27 = vector.broadcast %cst : f32 to vector<16x128xf32>
      %28 = arith.addf %27, %26 : vector<16x128xf32>
      %29 = arith.divf %27, %28 : vector<16x128xf32>
      %30 = arith.index_cast %22 : i32 to index
      %c0_9 = arith.constant 0 : index
      %31 = vector.load %arg3[%30, %c0_9] : memref<16x128xf32, #tpu.memory_space<vmem>>, vector<16x128xf32>
      %32 = arith.mulf %29, %31 : vector<16x128xf32>
      %33 = arith.addf %29, %31 : vector<16x128xf32>
      %c128_i32_10 = arith.constant 128 : i32
      %34 = arith.muli %22, %c128_i32_10 : i32
      %35 = vector.broadcast %34 : i32 to vector<16x128xi32>
      %36 = arith.addi %20, %35 : vector<16x128xi32>
      %37 = vector.broadcast %15 : i32 to vector<16x128xi32>
      %38 = arith.cmpi slt, %36, %37 : vector<16x128xi32>
      %cst_11 = arith.constant 0.000000e+00 : f32
      %39 = vector.broadcast %cst_11 : f32 to vector<16x128xf32>
      %40 = arith.select %38, %32, %39 : vector<16x128xi1>, vector<16x128xf32>
      %cst_12 = arith.constant 0.000000e+00 : f32
      %41 = vector.broadcast %cst_12 : f32 to vector<16x128xf32>
      %42 = arith.select %38, %33, %41 : vector<16x128xi1>, vector<16x128xf32>
      %c0_13 = arith.constant 0 : index
      %c0_14 = arith.constant 0 : index
      %43 = vector.load %arg6[%c0_13, %c0_14] : memref<8x128xf32, #tpu.memory_space<vmem>>, vector<8x128xf32>
      %44 = vector.shape_cast %40 : vector<16x128xf32> to vector<2x8x128xf32>
      %cst_15 = arith.constant dense<0.000000e+00> : vector<8x128xf32>
      %45 = vector.multi_reduction <add>, %44, %cst_15 [0] : vector<2x8x128xf32> to vector<8x128xf32>
      %46 = arith.addf %43, %45 : vector<8x128xf32>
      %c0_16 = arith.constant 0 : index
      %c0_17 = arith.constant 0 : index
      %47 = vector.load %arg6[%c0_16, %c0_17] : memref<8x128xf32, #tpu.memory_space<vmem>>, vector<8x128xf32>
      tpu.vector_store %arg6[%c0_16, %c0_17], %46 {strides = array<i32>} : memref<8x128xf32, #tpu.memory_space<vmem>>, vector<8x128xf32>,
      %c0_18 = arith.constant 0 : index
      %c0_19 = arith.constant 0 : index
      %48 = vector.load %arg7[%c0_18, %c0_19] : memref<8x128xf32, #tpu.memory_space<vmem>>, vector<8x128xf32>
      %49 = vector.shape_cast %42 : vector<16x128xf32> to vector<2x8x128xf32>
      %cst_20 = arith.constant dense<0.000000e+00> : vector<8x128xf32>
      %50 = vector.multi_reduction <add>, %49, %cst_20 [0] : vector<2x8x128xf32> to vector<8x128xf32>
      %51 = arith.addf %48, %50 : vector<8x128xf32>
      %c0_21 = arith.constant 0 : index
      %c0_22 = arith.constant 0 : index
      %52 = vector.load %arg7[%c0_21, %c0_22] : memref<8x128xf32, #tpu.memory_space<vmem>>, vector<8x128xf32>
      tpu.vector_store %arg7[%c0_21, %c0_22], %51 {strides = array<i32>} : memref<8x128xf32, #tpu.memory_space<vmem>>, vector<8x128xf32>,
      %c1_i32_23 = arith.constant 1 : i32
    } else {
    }
    %c0_i32_5 = arith.constant 0 : i32
    %11 = arith.cmpi eq, %arg1, %c0_i32_5 : i32
    %12 = arith.extui %11 : i1 to i32
    %c0_i32_6 = arith.constant 0 : i32
    %13 = arith.cmpi ne, %12, %c0_i32_6 : i32
    scf.if %13 {
      %c0 = arith.constant 0 : index
      %c0_7 = arith.constant 0 : index
      %14 = vector.load %arg6[%c0, %c0_7] : memref<8x128xf32, #tpu.memory_space<vmem>>, vector<8x128xf32>
      %15 = vector.shape_cast %14 : vector<8x128xf32> to vector<1x8x128xf32>
      %cst = arith.constant dense<0.000000e+00> : vector<1xf32>
      %16 = vector.multi_reduction <add>, %15, %cst [1, 2] : vector<1x8x128xf32> to vector<1xf32>
      %17 = vector.shape_cast %16 : vector<1xf32> to vector<1x1x1xf32>
      %18 = vector.extract %17[0, 0, 0] : f32 from vector<1x1x1xf32>
      %c0_8 = arith.constant 0 : index
      %c0_9 = arith.constant 0 : index
      %19 = memref.load %arg4[%c0_8, %c0_9] : memref<1x1xf32, #tpu.memory_space<smem>>
      memref.store %18, %arg4[%c0_8, %c0_9] : memref<1x1xf32, #tpu.memory_space<smem>>
      %c0_10 = arith.constant 0 : index
      %c0_11 = arith.constant 0 : index
      %20 = vector.load %arg7[%c0_10, %c0_11] : memref<8x128xf32, #tpu.memory_space<vmem>>, vector<8x128xf32>
      %21 = vector.shape_cast %20 : vector<8x128xf32> to vector<1x8x128xf32>
      %cst_12 = arith.constant dense<0.000000e+00> : vector<1xf32>
      %22 = vector.multi_reduction <add>, %21, %cst_12 [1, 2] : vector<1x8x128xf32> to vector<1xf32>
      %23 = vector.shape_cast %22 : vector<1xf32> to vector<1x1x1xf32>
      %24 = vector.extract %23[0, 0, 0] : f32 from vector<1x1x1xf32>
      %c0_13 = arith.constant 0 : index
      %c0_14 = arith.constant 0 : index
      %25 = memref.load %arg5[%c0_13, %c0_14] : memref<1x1xf32, #tpu.memory_space<smem>>
      memref.store %24, %arg5[%c0_13, %c0_14] : memref<1x1xf32, #tpu.memory_space<smem>>
    } else {
    }
    return
  }
  func.func @transform_0(%arg0: i32, %arg1: i32) -> (i32, i32) {
    %c1_i32 = arith.constant 1 : i32
    %0 = arith.muli %arg0, %c1_i32 : i32
    %1 = arith.addi %0, %arg1 : i32
    %c0_i32 = arith.constant 0 : i32
    %2 = arith.minsi %1, %c0_i32 : i32
    %c0_i32_0 = arith.constant 0 : i32
    %c0_i32_1 = arith.constant 0 : i32
    return %2, %c0_i32_0 : i32, i32
  }
  func.func @transform_1(%arg0: i32, %arg1: i32) -> (i32, i32) {
    %c1_i32 = arith.constant 1 : i32
    %0 = arith.muli %arg0, %c1_i32 : i32
    %1 = arith.addi %0, %arg1 : i32
    %c0_i32 = arith.constant 0 : i32
    %2 = arith.minsi %1, %c0_i32 : i32
    %c0_i32_0 = arith.constant 0 : i32
    %c0_i32_1 = arith.constant 0 : i32
    return %2, %c0_i32_0 : i32, i32
  }
  func.func @transform_2(%arg0: i32, %arg1: i32) -> (i32, i32) {
    %c0_i32 = arith.constant 0 : i32
    %c0_i32_0 = arith.constant 0 : i32
    return %arg0, %c0_i32 : i32, i32
  }
  func.func @transform_3(%arg0: i32, %arg1: i32) -> (i32, i32) {
    %c0_i32 = arith.constant 0 : i32
    %c0_i32_0 = arith.constant 0 : i32
    return %arg0, %c0_i32 : i32, i32
  }
}

</mosaic_0001>

<bundles_post_ra>
// kernel: tpu_custom_call.1
= control target key start
LH: loop header
LB: loop body
LE: loop exit
PB: predicated region body
PF: predicated region fallthrough
CT: control target
= control target key end

     0   :  { %9 = vsyncpa [#allocation5], 0  ;;  %s382_s0 = inlined_call_operand.hbm [shape: f32[16,128], index: 0, kind: input, shape index: {}]   ;;  %s383_s1 = inlined_call_operand.hbm [shape: f32[16,128], index: 1, kind: input, shape index: {}]   ;;  %s384_s2 = inlined_call_operand.hbm [shape: f32[1,1], index: 2, kind: output, shape index: {0}]   ;;  %s385_s3 = inlined_call_operand.hbm [shape: f32[1,1], index: 3, kind: output, shape index: {1}]  }
   0x1   :  { %10 = vsyncpa [#allocation8], 0 }
   0x2   :  { %11 = vsyncpa [#allocation6], 0 }
   0x3   :  { %12 = vsyncpa [#allocation11], 0  ;;  %s308_s12 = smov [#allocation4]   ;;  %s236_s16 = scalar_lea.hbm %s382_s0, 256 }
   0x4   :  { %s24_s13 = sshll.u32 %s308_s12, 4  ;;  %p237_p0 = scmp.ne.s32.totalorder %s382_s0, %s236_s16  ;;  %s25_s13 = int_to_ptr.vmem [resolvable:$true] %s24_s13 }
   0x5   :  { %p240_p1 = scmp.lt.u32.totalorder %s236_s16, %s382_s0 }
   0x7   :  { %p242_p2 = pnand %p240_p1, %p237_p0 }
   0x9   :  { %245 = shalt.err (!%p242_p2)
}
   0xa   :  { %s246_s21 = scalar_lea.vmem %s25_s13, 256  ;;  %p251_p4 = scmp.lt.s32.totalorder %s25_s13, %s25_s13 }
   0xb   :  { %p247_p3 = scmp.ne.s32.totalorder %s25_s13, %s246_s21  ;;  %p252_p5 = scmp.lt.s32.totalorder %s246_s21, %s246_s21 }
   0xd   :  { %p253_p6 = por %p252_p5, %p251_p4 }
   0xf   :  { %p254_p7 = pnand %p253_p6, %p247_p3 }
  0x11   :  { %257 = shalt.err (!%p254_p7)
}
  0x12   :  { %s309_s22 = smov 128   ;;  %s310_s23 = smov 8  }
  0x13   :  { %30 = dma.hbm_to_vmem [thread:$0]  %s382_s0, 256, %s25_s13, [#allocation5], %s309_s22, %s309_s22, %s310_s23  }
  0x14   :  { %s311_s26 = smov [#allocation7]   ;;  %s258_s30 = scalar_lea.hbm %s383_s1, 256 }
  0x15   :  { %s42_s27 = sshll.u32 %s311_s26, 4  ;;  %p259_p8 = scmp.ne.s32.totalorder %s383_s1, %s258_s30  ;;  %s43_s27 = int_to_ptr.vmem [resolvable:$true] %s42_s27 }
  0x16   :  { %p262_p9 = scmp.lt.u32.totalorder %s258_s30, %s383_s1 }
  0x18   :  { %p264_p10 = pnand %p262_p9, %p259_p8 }
  0x1a   :  { %267 = shalt.err (!%p264_p10)
}
  0x1b   :  { %s268_s8 = scalar_lea.vmem %s43_s27, 256  ;;  %p273_p12 = scmp.lt.s32.totalorder %s43_s27, %s43_s27 }
  0x1c   :  { %p269_p11 = scmp.ne.s32.totalorder %s43_s27, %s268_s8  ;;  %p274_p13 = scmp.lt.s32.totalorder %s268_s8, %s268_s8 }
  0x1e   :  { %p275_p0 = por %p274_p13, %p273_p12 }
  0x20   :  { %p276_p1 = pnand %p275_p0, %p269_p11 }
  0x22   :  { %279 = shalt.err (!%p276_p1)
}
  0x23   :  { %48 = dma.hbm_to_vmem [thread:$0]  %s383_s1, 256, %s43_s27, [#allocation8], %s309_s22, %s309_s22, %s310_s23  }
  0x24   :  { %300 = dma.done.wait [#allocation5], 256  }
  0x25   :  { %301 = vsyncadd [#allocation5], 4294967040 }
  0x26   :  { %302 = dma.done.wait [#allocation8], 256  }
  0x27   :  { %303 = vsyncadd [#allocation8], 4294967040  ;;  %v74_v0 = vld [vmem:[#allocation4] sm:$0xff]  ;;  %v75_v1 = vld [vmem:[#allocation4 + $0x8] sm:$0xff]  ;;  %s280_s12 = scalar_lea.hbm %s384_s2, 16 }
  0x28   :  { %v214_v2 = vmul.f32 -1.442695, %v74_v0  ;;  %v215_v3 = vmul.f32 -1.442695, %v75_v1  ;;  %v88_v8 = vld [vmem:[#allocation7] sm:$0xff]  ;;  %v89_v9 = vld [vmem:[#allocation7 + $0x8] sm:$0xff]  ;;  %p281_p2 = scmp.ne.s32.totalorder %s384_s2, %s280_s12  ;;  %p284_p3 = scmp.lt.u32.totalorder %s280_s12, %s384_s2 }
  0x2a   :  { %228 = vpow2.f32 %v214_v2  ;;  %p286_p4 = pnand %p284_p3, %p281_p2 }
  0x2b   :  { %230 = vpow2.f32 %v215_v3 }
  0x34   :  { %v229_v4 = vpop.eup %228 }
  0x35   :  { %v231_v5 = vpop.eup %230  ;;  %v82_v6 = vadd.f32 1.0, %v229_v4 }
  0x36   :  { %v83_v7 = vadd.f32 1.0, %v231_v5 }
  0x37   :  { %232 = vrcp.f32 %v82_v6 }
  0x38   :  { %234 = vrcp.f32 %v83_v7 }
  0x41   :  { %v233_v10 = vpop.eup %232 }
  0x42   :  { %v235_v11 = vpop.eup %234  ;;  %v90_v12 = vmul.f32 %v233_v10, %v88_v8  ;;  %v92_v14 = vadd.f32 %v233_v10, %v88_v8 }
  0x43   :  { %v91_v13 = vmul.f32 %v235_v11, %v89_v9  ;;  %v93_v15 = vadd.f32 %v235_v11, %v89_v9 }
  0x45   :  { %v95_v16 = vadd.f32 %v91_v13, %v90_v12  ;;  %v99_v17 = vadd.f32 %v93_v15, %v92_v14 }
  0x47   :  { %160 = vadd.xlane.f32.xlu0 %v95_v16 }
  0x4b   :  { %172 = vadd.xlane.f32.xlu0 %v99_v17 }
  0xd4   :  { %v161_v18 = vpop.xlane.xlu0 %160 }
  0xd5   :  { %v162_v19 = vrot.slane %v161_v18, 4 }
  0xd7   :  { %v163_v20 = vadd.f32 %v162_v19, %v161_v18 }
  0xd8   :  { %v173_v21 = vpop.xlane.xlu0 %172 }
  0xd9   :  { %v164_v22 = vrot.slane %v163_v20, 2  ;;  %v174_v23 = vrot.slane %v173_v21, 4 }
  0xdb   :  { %v175_v24 = vadd.f32 %v174_v23, %v173_v21  ;;  %v165_v25 = vadd.f32 %v164_v22, %v163_v20 }
  0xdd   :  { %v176_v26 = vrot.slane %v175_v24, 2  ;;  %v166_v27 = vrot.slane %v165_v25, 1 }
  0xdf   :  { %v177_v28 = vadd.f32 %v176_v26, %v175_v24  ;;  %v167_v29 = vadd.f32 %v166_v27, %v165_v25 }
  0xe1   :  { %218 = vpush %v167_v29  ;;  %v178_v30 = vrot.slane %v177_v28, 1 }
  0xe3   :  { %v179_v31 = vadd.f32 %v178_v30, %v177_v28 }
  0xe5   :  { %220 = vpush %v179_v31 }
 0x112   :  { %s219_s1 = spop %218 }
 0x113   :  { %170 = sst [smem:[#allocation9]] %s219_s1 }
 0x114   :  { %289 = shalt.err (!%p286_p4)
}
 0x115   :  { %s312_s17 = smov [#allocation9]   ;;  %s290_s23 = scalar_lea.hbm %s385_s3, 16 }
 0x116   :  { %190 = dma.smem_to_hbm %s312_s17, 16, %s384_s2, [#allocation6]  }
 0x117   :  { %s221_s20 = spop %220  ;;  %p291_p5 = scmp.ne.s32.totalorder %s385_s3, %s290_s23 }
 0x118   :  { %182 = sst [smem:[#allocation10]] %s221_s20  ;;  %p294_p6 = scmp.lt.u32.totalorder %s290_s23, %s385_s3 }
 0x11a   :  { %p296_p7 = pnand %p294_p6, %p291_p5 }
 0x11c   :  { %299 = shalt.err (!%p296_p7)
}
 0x11d   :  { %s313_s28 = smov [#allocation10]  }
 0x11e   :  { %198 = dma.smem_to_hbm %s313_s28, 16, %s385_s3, [#allocation11]  }
 0x11f   :  { %304 = dma.done.wait [#allocation6], 16  }
 0x120   :  { %305 = vsyncadd [#allocation6], 4294967280 }
 0x121   :  { %306 = dma.done.wait [#allocation11], 16  }
 0x122   :  { %307 = vsyncadd [#allocation11], 4294967280 }
 0x123   :  { %205 = sfence }
 0x124   :  { %206 = vsyncpa [#allocation5], 1 }
 0x125   :  { %207 = vsyncpa [#allocation8], 1 }
 0x126   :  { %208 = vsyncpa [#allocation6], 1 }
 0x127   :  { %209 = vsyncpa [#allocation11], 1 }

</bundles_post_ra>
